<compile_context>
chip_gen: v7x
topology: tpu7x:2x2x1
jax: 0.10.0
libtpu: 0.0.40
codegen_flags: <defaults>
</compile_context>

<pallas_src>
import functools

import jax
import jax.numpy as jnp
from jax.experimental import pallas as pl
from jax.experimental.pallas import tpu as pltpu


def _focal_loss_kernel(logits_ref, tgt_ref, out_ref, *, alpha, gamma,
                       num_classes, rows_total, tile_r, ignore_index,
                       needs_tail_mask):
    """One (image, row-tile) grid step: per-tile partial focal-loss sums.

    logits_ref: [1, C, tile_r, 128] float  (tokens packed as dense 8x128 vregs)
    tgt_ref:    [1, tile_r, 128]    int32
    out_ref:    [1, 1, out_rows, 128] f32 partial-sum slab; the sum of its
                elements equals the focal-loss sum over this tile.
    """
    tgt = tgt_ref[0]                                           # [tile_r, 128]

    # ---- class max (pass 1): C-1 elementwise VPU maxes on [R,128] slabs. ----
    m = logits_ref[0, 0].astype(jnp.float32)
    for ci in range(1, num_classes):
        m = jnp.maximum(m, logits_ref[0, ci].astype(jnp.float32))

    need_pt = gamma != 0.0

    # ---- pass 2: stream classes; accumulate sum-exp / picked logit / exp. ---
    sum_exp = jnp.zeros_like(m)
    picked = jnp.zeros_like(m)
    picked_exp = jnp.zeros_like(m) if need_pt else None
    for ci in range(num_classes):
        xc = logits_ref[0, ci].astype(jnp.float32)             # [R, 128]
        e = jnp.exp(xc - m)                                    # EUP
        sum_exp = sum_exp + e
        sel = tgt == ci
        picked = jnp.where(sel, xc, picked)
        if need_pt:
            picked_exp = jnp.where(sel, e, picked_exp)

    lse = jnp.log(sum_exp) + m
    ce = lse - picked        # raw CE; garbage / ignored tokens masked below

    if not need_pt:
        focal = alpha * ce                                     # (1-pt)**0 == 1
    else:
        # pt = softmax(x)[target], reusing exp(x - m): no extra exp pass.
        pt = picked_exp * pl.reciprocal(sum_exp, approx=True)
        one_minus_pt = jnp.maximum(1.0 - pt, 0.0)
        if gamma > 0.0 and float(gamma).is_integer():
            w = one_minus_pt
            for _ in range(int(gamma) - 1):                    # VPU multiplies
                w = w * one_minus_pt
        else:
            # Clamp before pow: avoids log(0) in the exp/log lowering of **.
            w = jnp.maximum(one_minus_pt, 1e-20) ** gamma
        focal = (alpha * w) * ce

    # ---- validity mask last, so garbage DMA-tail data can't leak NaNs. ------
    valid = tgt != ignore_index
    if needs_tail_mask:
        j = pl.program_id(1)
        row = j * tile_r + jax.lax.broadcasted_iota(jnp.int32, (tile_r, 128), 0)
        valid = valid & (row < rows_total)
    focal = jnp.where(valid, focal, 0.0)

    # ---- fold rows down to one (8,128) slab with strided VPU adds. ----------
    if tile_r % 8 == 0:
        partial = jnp.sum(focal.reshape(tile_r // 8, 8, 128), axis=0)
    else:
        # Tiny full-extent tile (tile_r == rows_total, not a multiple of 8):
        # a single sublane reduce on a tiny array; perf-irrelevant.
        partial = jnp.sum(focal, axis=0, keepdims=True)
    out_ref[0, 0] = partial


def _block_budget_and_vmem_limit():
    """Generation-aware block budget: bigger blocks on 128-MiB-VMEM chips."""
    cap = None
    try:
        cap = getattr(pltpu.get_tpu_info(), "vmem_capacity_bytes", None)
    except Exception:
        cap = None
    if cap is not None and cap >= 100 * 1024 * 1024:   # v5e / v6e (128 MiB VMEM)
        return 8 * 1024 * 1024, 64 * 1024 * 1024
    return 4 * 1024 * 1024, 32 * 1024 * 1024           # v7x (64 MiB) / unknown


def _pick_tile_rows(rows, c, budget_bytes, n_images):
    """Rows of 128 tokens per block, sized from an f32-equivalent byte budget."""
    t = (budget_bytes // (c * 4 * 128)) // 8 * 8
    t = max(8, t)
    if t >= rows:
        t = rows                       # full-extent block: always layout-legal
    # Guarantee >= 2 total grid steps when possible so ("parallel","parallel")
    # can actually shard across v7x's two TensorCores even at N == 1.
    if n_images * pl.cdiv(rows, t) < 2 and rows >= 16:
        t = ((rows // 2 + 7) // 8) * 8
    return t


def focal_loss_pallas(logits_nchw, targets, *, alpha=1.0, gamma=0.0,
                      size_average=True, ignore_index=255, block_bytes=None):
    """Pallas implementation of FocalLoss.forward.

    logits_nchw: [N, C, H, W] float (f32/bf16), or a dict with key 'out'
                 (matching the PyTorch module's `inputs['out']`).
    targets:     [N, H, W] int
    """
    if isinstance(logits_nchw, dict):
        logits_nchw = logits_nchw["out"]
    n, c, h, w = logits_nchw.shape
    hw = h * w

    auto_budget, vmem_limit = _block_budget_and_vmem_limit()
    budget = auto_budget if block_bytes is None else int(block_bytes)

    # Pack tokens into dense (rows, 128) vregs.  Free reshape when HW % 128
    # == 0; otherwise pad once (padded targets = ignore_index -> contribute 0).
    logits = logits_nchw.reshape(n, c, hw)
    tgt = targets.reshape(n, hw).astype(jnp.int32)
    rows = pl.cdiv(hw, 128)
    hw_pad = rows * 128
    if hw_pad != hw:
        logits = jnp.pad(logits, ((0, 0), (0, 0), (0, hw_pad - hw)))
        tgt = jnp.pad(tgt, ((0, 0), (0, hw_pad - hw)),
                      constant_values=ignore_index)
    logits = logits.reshape(n, c, rows, 128)
    tgt = tgt.reshape(n, rows, 128)

    tile_r = _pick_tile_rows(rows, c, budget, n)
    n_r = pl.cdiv(rows, tile_r)
    needs_tail_mask = (rows % tile_r) != 0
    out_rows = 8 if tile_r % 8 == 0 else 1

    kernel = functools.partial(
        _focal_loss_kernel, alpha=float(alpha), gamma=float(gamma),
        num_classes=c, rows_total=rows, tile_r=tile_r,
        ignore_index=int(ignore_index), needs_tail_mask=needs_tail_mask)

    tokens = n * rows * 128
    cost = pl.CostEstimate(
        flops=int(tokens * (8 * c + 16)),
        transcendentals=int(tokens * (c + 3)),   # C exps + log + rcp (+ slack)
        bytes_accessed=int(logits.size * jnp.dtype(logits.dtype).itemsize
                           + tgt.size * 4 + n * n_r * out_rows * 128 * 4),
    )

    partials = pl.pallas_call(
        kernel,
        out_shape=jax.ShapeDtypeStruct((n, n_r, out_rows, 128), jnp.float32),
        grid_spec=pltpu.PrefetchScalarGridSpec(
            num_scalar_prefetch=0,
            grid=(n, n_r),
            in_specs=[
                pl.BlockSpec((1, c, tile_r, 128), lambda b, j: (b, 0, j, 0)),
                pl.BlockSpec((1, tile_r, 128), lambda b, j: (b, j, 0)),
            ],
            out_specs=pl.BlockSpec((1, 1, out_rows, 128),
                                   lambda b, j: (b, j, 0, 0)),
        ),
        compiler_params=pltpu.CompilerParams(
            dimension_semantics=("parallel", "parallel"),
            vmem_limit_bytes=vmem_limit,
        ),
        cost_estimate=cost,
    )(logits, tgt)

    total = jnp.sum(partials)
    if size_average:
        # PyTorch: ce_loss (reduction='none') is 0 at ignored positions, then
        # .mean() divides by the TOTAL number of elements (including ignored).
        return total / jnp.float32(n * hw)
    return total


def focal_loss_reference(logits_nchw, targets, *, alpha=1.0, gamma=0.0,
                         size_average=True, ignore_index=255):
    """Pure-JAX reference matching the PyTorch semantics."""
    logp = jax.nn.log_softmax(logits_nchw.astype(jnp.float32), axis=1)
    tgt = targets.astype(jnp.int32)
    valid = tgt != ignore_index
    safe_t = jnp.where(valid, tgt, 0)
    picked = jnp.take_along_axis(logp, safe_t[:, None, :, :], axis=1)[:, 0]
    ce = jnp.where(valid, -picked, 0.0)
    pt = jnp.exp(-ce)
    fl = alpha * (1.0 - pt) ** gamma * ce
    return fl.mean() if size_average else fl.sum()


if __name__ == "__main__":
    # Test 1: default path, single small block per image, integer gamma, mean.
    key = jax.random.PRNGKey(0)
    k1, k2, k3 = jax.random.split(key, 3)
    N, C, H, W = 2, 4, 16, 16
    logits = jax.random.normal(k1, (N, C, H, W), dtype=jnp.float32)
    targets = jax.random.randint(k2, (N, H, W), 0, C, dtype=jnp.int32)
    targets = jnp.where(jax.random.bernoulli(k3, 0.1, (N, H, W)), 255, targets)

    out = focal_loss_pallas(logits, targets, alpha=0.75, gamma=2.0,
                            size_average=True, ignore_index=255)
    out = jax.block_until_ready(out)
    ref = focal_loss_reference(logits, targets, alpha=0.75, gamma=2.0,
                               size_average=True, ignore_index=255)
    # approx reciprocal in the pt path -> allow ~1e-3-level relative deviation.
    assert jnp.allclose(out, ref, rtol=1e-2, atol=1e-5), (out, ref)

    # Test 2: ragged HW (not a multiple of 128) + forced multi-row-tile grid
    # with a tail mask, gamma=0 fast path, sum reduction.
    k4, k5, k6 = jax.random.split(jax.random.PRNGKey(1), 3)
    N2, C2, H2, W2 = 2, 4, 48, 49
    logits2 = jax.random.normal(k4, (N2, C2, H2, W2), dtype=jnp.float32)
    targets2 = jax.random.randint(k5, (N2, H2, W2), 0, C2, dtype=jnp.int32)
    targets2 = jnp.where(jax.random.bernoulli(k6, 0.1, (N2, H2, W2)), 255,
                         targets2)
    out2 = focal_loss_pallas(logits2, targets2, alpha=1.0, gamma=0.0,
                             size_average=False, ignore_index=255,
                             block_bytes=16 * 1024)
    out2 = jax.block_until_ready(out2)
    ref2 = focal_loss_reference(logits2, targets2, alpha=1.0, gamma=0.0,
                                size_average=False, ignore_index=255)
    assert jnp.allclose(out2, ref2, rtol=1e-4, atol=1e-3), (out2, ref2)

    # Test 3: N == 1 (exercises the forced >=2-step grid split for megacore)
    # with a non-integer gamma (pow path) and mean reduction.
    k7, k8, k9 = jax.random.split(jax.random.PRNGKey(2), 3)
    N3, C3, H3, W3 = 1, 3, 64, 64
    logits3 = jax.random.normal(k7, (N3, C3, H3, W3), dtype=jnp.float32)
    targets3 = jax.random.randint(k8, (N3, H3, W3), 0, C3, dtype=jnp.int32)
    targets3 = jnp.where(jax.random.bernoulli(k9, 0.1, (N3, H3, W3)), 255,
                         targets3)
    out3 = focal_loss_pallas(logits3, targets3, alpha=0.5, gamma=2.5,
                             size_average=True, ignore_index=255)
    out3 = jax.block_until_ready(out3)
    ref3 = focal_loss_reference(logits3, targets3, alpha=0.5, gamma=2.5,
                                size_average=True, ignore_index=255)
    assert jnp.allclose(out3, ref3, rtol=1e-2, atol=1e-5), (out3, ref3)

    print("KERNEL_OK")
</pallas_src>

<mosaic_0001>
module attributes {stable_mosaic.version = 11 : i64} {
  func.func @_focal_loss_kernel(%arg0: i32, %arg1: i32, %arg2: memref<1x4x2x128xf32, #tpu.memory_space<vmem>>, %arg3: memref<1x2x128xi32, #tpu.memory_space<vmem>>, %arg4: memref<1x1x1x128xf32, #tpu.memory_space<vmem>>) attributes {dimension_semantics = [#tpu.dimension_semantics<parallel>, #tpu.dimension_semantics<parallel>], iteration_bounds = array<i64: 2, 1>, scalar_prefetch = 0 : i64, scratch_operands = 0 : i64, tpu.core_type = #tpu.core_type<tc>, window_params = [{transform_indices = @transform_0, window_bounds = array<i64: 1, 4, 2, 128>}, {transform_indices = @transform_1, window_bounds = array<i64: 1, 2, 128>}, {transform_indices = @transform_2, window_bounds = array<i64: 1, 1, 1, 128>}]} {
    %c0 = arith.constant 0 : index
    %c0_0 = arith.constant 0 : index
    %c0_1 = arith.constant 0 : index
    %0 = vector.load %arg3[%c0, %c0_0, %c0_1] : memref<1x2x128xi32, #tpu.memory_space<vmem>>, vector<1x2x128xi32>
    %1 = vector.shape_cast %0 : vector<1x2x128xi32> to vector<2x128xi32>
    %c0_2 = arith.constant 0 : index
    %c0_3 = arith.constant 0 : index
    %c0_4 = arith.constant 0 : index
    %c0_5 = arith.constant 0 : index
    %2 = vector.load %arg2[%c0_2, %c0_3, %c0_4, %c0_5] : memref<1x4x2x128xf32, #tpu.memory_space<vmem>>, vector<1x1x2x128xf32>
    %3 = vector.shape_cast %2 : vector<1x1x2x128xf32> to vector<2x128xf32>
    %c0_6 = arith.constant 0 : index
    %c1 = arith.constant 1 : index
    %c0_7 = arith.constant 0 : index
    %c0_8 = arith.constant 0 : index
    %4 = vector.load %arg2[%c0_6, %c1, %c0_7, %c0_8] : memref<1x4x2x128xf32, #tpu.memory_space<vmem>>, vector<1x1x2x128xf32>
    %5 = vector.shape_cast %4 : vector<1x1x2x128xf32> to vector<2x128xf32>
    %6 = arith.maximumf %3, %5 : vector<2x128xf32>
    %c0_9 = arith.constant 0 : index
    %c2 = arith.constant 2 : index
    %c0_10 = arith.constant 0 : index
    %c0_11 = arith.constant 0 : index
    %7 = vector.load %arg2[%c0_9, %c2, %c0_10, %c0_11] : memref<1x4x2x128xf32, #tpu.memory_space<vmem>>, vector<1x1x2x128xf32>
    %8 = vector.shape_cast %7 : vector<1x1x2x128xf32> to vector<2x128xf32>
    %9 = arith.maximumf %6, %8 : vector<2x128xf32>
    %c0_12 = arith.constant 0 : index
    %c3 = arith.constant 3 : index
    %c0_13 = arith.constant 0 : index
    %c0_14 = arith.constant 0 : index
    %10 = vector.load %arg2[%c0_12, %c3, %c0_13, %c0_14] : memref<1x4x2x128xf32, #tpu.memory_space<vmem>>, vector<1x1x2x128xf32>
    %11 = vector.shape_cast %10 : vector<1x1x2x128xf32> to vector<2x128xf32>
    %12 = arith.maximumf %9, %11 : vector<2x128xf32>
    %cst = arith.constant 0.000000e+00 : f32
    %13 = vector.broadcast %cst : f32 to vector<2x128xf32>
    %cst_15 = arith.constant 0.000000e+00 : f32
    %14 = vector.broadcast %cst_15 : f32 to vector<2x128xf32>
    %cst_16 = arith.constant 0.000000e+00 : f32
    %15 = vector.broadcast %cst_16 : f32 to vector<2x128xf32>
    %c0_17 = arith.constant 0 : index
    %c0_18 = arith.constant 0 : index
    %c0_19 = arith.constant 0 : index
    %c0_20 = arith.constant 0 : index
    %16 = vector.load %arg2[%c0_17, %c0_18, %c0_19, %c0_20] : memref<1x4x2x128xf32, #tpu.memory_space<vmem>>, vector<1x1x2x128xf32>
    %17 = vector.shape_cast %16 : vector<1x1x2x128xf32> to vector<2x128xf32>
    %18 = arith.subf %17, %12 : vector<2x128xf32>
    %19 = math.exp %18 : vector<2x128xf32>
    %20 = arith.addf %13, %19 : vector<2x128xf32>
    %c0_i32 = arith.constant 0 : i32
    %21 = vector.broadcast %c0_i32 : i32 to vector<2x128xi32>
    %22 = arith.cmpi eq, %1, %21 : vector<2x128xi32>
    %23 = arith.select %22, %17, %14 : vector<2x128xi1>, vector<2x128xf32>
    %24 = arith.select %22, %19, %15 : vector<2x128xi1>, vector<2x128xf32>
    %c0_21 = arith.constant 0 : index
    %c1_22 = arith.constant 1 : index
    %c0_23 = arith.constant 0 : index
    %c0_24 = arith.constant 0 : index
    %25 = vector.load %arg2[%c0_21, %c1_22, %c0_23, %c0_24] : memref<1x4x2x128xf32, #tpu.memory_space<vmem>>, vector<1x1x2x128xf32>
    %26 = vector.shape_cast %25 : vector<1x1x2x128xf32> to vector<2x128xf32>
    %27 = arith.subf %26, %12 : vector<2x128xf32>
    %28 = math.exp %27 : vector<2x128xf32>
    %29 = arith.addf %20, %28 : vector<2x128xf32>
    %c1_i32 = arith.constant 1 : i32
    %30 = vector.broadcast %c1_i32 : i32 to vector<2x128xi32>
    %31 = arith.cmpi eq, %1, %30 : vector<2x128xi32>
    %32 = arith.select %31, %26, %23 : vector<2x128xi1>, vector<2x128xf32>
    %33 = arith.select %31, %28, %24 : vector<2x128xi1>, vector<2x128xf32>
    %c0_25 = arith.constant 0 : index
    %c2_26 = arith.constant 2 : index
    %c0_27 = arith.constant 0 : index
    %c0_28 = arith.constant 0 : index
    %34 = vector.load %arg2[%c0_25, %c2_26, %c0_27, %c0_28] : memref<1x4x2x128xf32, #tpu.memory_space<vmem>>, vector<1x1x2x128xf32>
    %35 = vector.shape_cast %34 : vector<1x1x2x128xf32> to vector<2x128xf32>
    %36 = arith.subf %35, %12 : vector<2x128xf32>
    %37 = math.exp %36 : vector<2x128xf32>
    %38 = arith.addf %29, %37 : vector<2x128xf32>
    %c2_i32 = arith.constant 2 : i32
    %39 = vector.broadcast %c2_i32 : i32 to vector<2x128xi32>
    %40 = arith.cmpi eq, %1, %39 : vector<2x128xi32>
    %41 = arith.select %40, %35, %32 : vector<2x128xi1>, vector<2x128xf32>
    %42 = arith.select %40, %37, %33 : vector<2x128xi1>, vector<2x128xf32>
    %c0_29 = arith.constant 0 : index
    %c3_30 = arith.constant 3 : index
    %c0_31 = arith.constant 0 : index
    %c0_32 = arith.constant 0 : index
    %43 = vector.load %arg2[%c0_29, %c3_30, %c0_31, %c0_32] : memref<1x4x2x128xf32, #tpu.memory_space<vmem>>, vector<1x1x2x128xf32>
    %44 = vector.shape_cast %43 : vector<1x1x2x128xf32> to vector<2x128xf32>
    %45 = arith.subf %44, %12 : vector<2x128xf32>
    %46 = math.exp %45 : vector<2x128xf32>
    %47 = arith.addf %38, %46 : vector<2x128xf32>
    %c3_i32 = arith.constant 3 : i32
    %48 = vector.broadcast %c3_i32 : i32 to vector<2x128xi32>
    %49 = arith.cmpi eq, %1, %48 : vector<2x128xi32>
    %50 = arith.select %49, %44, %41 : vector<2x128xi1>, vector<2x128xf32>
    %51 = arith.select %49, %46, %42 : vector<2x128xi1>, vector<2x128xf32>
    %52 = math.log %47 : vector<2x128xf32>
    %53 = arith.addf %52, %12 : vector<2x128xf32>
    %54 = arith.subf %53, %50 : vector<2x128xf32>
    %55 = tpu.reciprocal %47 {approx = true} : vector<2x128xf32> -> vector<2x128xf32>
    %56 = arith.mulf %51, %55 : vector<2x128xf32>
    %cst_33 = arith.constant 1.000000e+00 : f32
    %57 = vector.broadcast %cst_33 : f32 to vector<2x128xf32>
    %58 = arith.subf %57, %56 : vector<2x128xf32>
    %cst_34 = arith.constant 0.000000e+00 : f32
    %59 = vector.broadcast %cst_34 : f32 to vector<2x128xf32>
    %60 = arith.maximumf %58, %59 : vector<2x128xf32>
    %61 = arith.mulf %60, %60 : vector<2x128xf32>
    %cst_35 = arith.constant 7.500000e-01 : f32
    %62 = vector.broadcast %cst_35 : f32 to vector<2x128xf32>
    %63 = arith.mulf %62, %61 : vector<2x128xf32>
    %64 = arith.mulf %63, %54 : vector<2x128xf32>
    %c255_i32 = arith.constant 255 : i32
    %65 = vector.broadcast %c255_i32 : i32 to vector<2x128xi32>
    %66 = arith.cmpi ne, %1, %65 : vector<2x128xi32>
    %cst_36 = arith.constant 0.000000e+00 : f32
    %67 = vector.broadcast %cst_36 : f32 to vector<2x128xf32>
    %68 = arith.select %66, %64, %67 : vector<2x128xi1>, vector<2x128xf32>
    %cst_37 = arith.constant dense<0.000000e+00> : vector<128xf32>
    %69 = vector.multi_reduction <add>, %68, %cst_37 [0] : vector<2x128xf32> to vector<128xf32>
    %70 = vector.shape_cast %69 : vector<128xf32> to vector<1x128xf32>
    %c0_38 = arith.constant 0 : index
    %c0_39 = arith.constant 0 : index
    %c0_40 = arith.constant 0 : index
    %c0_41 = arith.constant 0 : index
    %71 = vector.load %arg4[%c0_38, %c0_39, %c0_40, %c0_41] : memref<1x1x1x128xf32, #tpu.memory_space<vmem>>, vector<1x1x1x128xf32>
    %72 = vector.shape_cast %71 : vector<1x1x1x128xf32> to vector<1x128xf32>
    %73 = vector.shape_cast %70 : vector<1x128xf32> to vector<1x1x1x128xf32>
    tpu.vector_store %arg4[%c0_38, %c0_39, %c0_40, %c0_41], %73 {strides = array<i32>} : memref<1x1x1x128xf32, #tpu.memory_space<vmem>>, vector<1x1x1x128xf32>,
    return
  }
  func.func @transform_0(%arg0: i32, %arg1: i32) -> (i32, i32, i32, i32) {
    %c0_i32 = arith.constant 0 : i32
    %c0_i32_0 = arith.constant 0 : i32
    %c0_i32_1 = arith.constant 0 : i32
    return %arg0, %c0_i32, %arg1, %c0_i32_0 : i32, i32, i32, i32
  }
  func.func @transform_1(%arg0: i32, %arg1: i32) -> (i32, i32, i32) {
    %c0_i32 = arith.constant 0 : i32
    %c0_i32_0 = arith.constant 0 : i32
    return %arg0, %arg1, %c0_i32 : i32, i32, i32
  }
  func.func @transform_2(%arg0: i32, %arg1: i32) -> (i32, i32, i32, i32) {
    %c0_i32 = arith.constant 0 : i32
    %c0_i32_0 = arith.constant 0 : i32
    %c0_i32_1 = arith.constant 0 : i32
    return %arg0, %arg1, %c0_i32, %c0_i32_0 : i32, i32, i32, i32
  }
}

</mosaic_0001>

<bundles_post_ra>
// kernel: tpu_custom_call.1
= control target key start
LH: loop header
LB: loop body
LE: loop exit
PB: predicated region body
PF: predicated region fallthrough
CT: control target
= control target key end

     0   :  { %7 = vsyncpa [#allocation3], 0  ;;  %s878_s0 = inlined_call_operand.hbm [shape: f32[2,4,2,128], index: 0, kind: input, shape index: {}]   ;;  %s879_s1 = inlined_call_operand.hbm [shape: s32[2,2,128], index: 1, kind: input, shape index: {}]   ;;  %s880_s2 = inlined_call_operand.hbm [shape: f32[2,1,1,128], index: 2, kind: output, shape index: {}]  }
   0x1   :  { %9 = vsyncpa [#allocation3 + $0x1], 0 }
   0x2   :  { %10 = vsyncpa [#allocation6], 0 }
   0x3   :  { %12 = vsyncpa [#allocation6 + $0x1], 0 }
   0x4   :  { %13 = vsyncpa [#allocation4], 0 }
   0x5   :  { %15 = vsyncpa [#allocation4 + $0x1], 0  ;;  %s662_s9 = smov 0   ;;  %s664_s10 = smov 0  }
   0x6   :  { %s666_s11 = smov 0   ;;  %s668_s12 = smov 0  }
   0x7   :  { %s670_s13 = smov 0   ;;  %s672_s14 = smov 0  }
   0x8 LB: > { %s394_s15 = sadd.s32 4294967295, %s640_s14   ;;  %s395_s16 = sadd.s32 4294967294, %s640_s14   ;;  %s640_s14 = sphi %s672_s14, %s21_s14   ;;  %s636_s13 = sphi %s670_s13, %s899_s13   ;;  %s632_s12 = sphi %s668_s12, %s898_s12   ;;  %s628_s11 = sphi %s666_s11, %s897_s11   ;;  %s624_s10 = sphi %s664_s10, %s896_s10   ;;  %s620_s9 = sphi %s662_s9, %s895_s9  }
   0x9   : > { %s33_s17 = sadd.s32 1, %s636_s13  ;;  %s42_s18 = sadd.s32 1, %s628_s11 }
   0xa   : > { %p35_p0 = scmp.ge.s32.totalorder %s33_s17, 2  ;;  %p49_p1 = scmp.ne.s32.totalorder %s628_s11, %s624_s10 }
   0xb   : > { %p50_p2 = scmp.eq.s32.totalorder %s640_s14, 0  ;;  %p55_p3 = scmp.ne.s32.totalorder %s624_s10, %s620_s9 }
   0xc   : > { %s901_s17 = smov (%p35_p0, %s33_s17), 0  ;;  %p56_p5 = scmp.eq.s32.totalorder %s394_s15, 0 }
   0xd   : > { %p703_p4 = por %p50_p2, %p49_p1  ;;  %s37_s20 = ssub.s32 %s636_s13, %s901_s17 }
   0xe   : > { %p109_p6 = scmp.eq.s32.totalorder %s394_s15, 1  ;;  %p40_p7 = scmp.eq.s32.totalorder %s37_s20, 0 }
   0xf   : > { %p709_p8 = por %p56_p5, %p55_p3  ;;  %p115_p10 = scmp.eq.s32.totalorder %s395_s16, 1 }
  0x10   : > { %p713_p9 = por %p109_p6, %p49_p1  ;;  %p430_p13 = scmp.lt.s32.totalorder %s640_s14, 2 }
  0x11   : > { %s884_s21 = scalar_select %p709_p8, 1, 0 }
  0x12   : > { %s885_s22 = scalar_select %p713_p9, 1, 0 }
  0x13   : > { %s718_s23 = scalar_select %p40_p7, %s628_s11, %s42_s18  }
  0x14   : > { %p720_p11 = por %p115_p10, %p55_p3  ;;  %s727_s25 = sand.u32 1, %s628_s11  }
  0x15   : > { %s398_s26 = sshll.u32 %s727_s25, 3  ;;  %s412_s27 = sshll.u32 %s636_s13, 7 }
  0x16   : > { %s886_s24 = scalar_select %p720_p11, 1, 0 }
  0x17   : > { %s734_s30 = scalar_lea.hbm %s878_s0, %s412_s27  ;;  %s139_s3 = scalar_lea.vmem [#allocation2], %s398_s26 }
  0x18   : > { %s147_s4 = sshll.u32 %s139_s3, 4  ;;  %p740_p0 = pnand %p430_p13, %p703_p4  ;;  %s736_s4 = int_to_ptr.vmem [resolvable:$true] %s147_s4 }
  0x19   : > { %s136_s6 = scalar_lea.sflag [#allocation3], %s727_s25  ;;  %s494_s7 = scalar_lea.hbm %s734_s30, 128 }
  0x1a   : > { %p495_p2 = scmp.ne.s32.totalorder %s734_s30, %s494_s7  ;;  %p496_p3 = pneg %p740_p0 }
  0x1b   : > { %s499_s16 = scalar_lea.hbm %s878_s0, 256  ;;  %p500_p4 = scmp.lt.u32.totalorder %s734_s30, %s878_s0 }
  0x1c   : > { %p497_p5 = pnand %p496_p3, %p495_p2  ;;  %p501_p7 = scmp.lt.u32.totalorder %s499_s16, %s494_s7 }
  0x1d   : > { %p503_p13 = scmp.lt.u32.totalorder %s494_s7, %s734_s30 }
  0x1e   : > { %p498_p6 = pneg %p497_p5  ;;  %p502_p10 = por %p501_p7, %p500_p4 }
  0x20   : > { %p504_p12 = por %p503_p13, %p502_p10 }
  0x22   : > { %p505_p1 = pnand %p504_p12, %p498_p6 }
  0x24   : > { %508 = shalt.err (!%p505_p1)
}
  0x25   : > { %s509_s20 = scalar_lea.vmem %s736_s4, 128  ;;  %s642_s26 = smov [#allocation2]  }
  0x26   : > { %p510_p2 = scmp.ne.s32.totalorder %s736_s4, %s509_s20  ;;  %s514_s27 = sshll.u32 %s642_s26, 4  ;;  %s515_s27 = int_to_ptr.vmem [resolvable:$false] %s514_s27 }
  0x27   : > { %s516_s28 = scalar_lea.vmem %s515_s27, 256  ;;  %p517_p9 = scmp.lt.s32.totalorder %s736_s4, %s515_s27 }
  0x28   : > { %p512_p5 = pnand %p510_p2, %p496_p3  ;;  %p518_p4 = scmp.lt.s32.totalorder %s516_s28, %s509_s20 }
  0x2a   : > { %p513_p11 = pneg %p512_p5  ;;  %p519_p7 = por %p518_p4, %p517_p9 }
  0x2c   : > { %p520_p10 = pnand %p519_p7, %p513_p11 }
  0x2e   : > { %523 = shalt.err (!%p520_p10)
}
  0x2f   : > { %s643_s29 = smov 32   ;;  %s644_s3 = smov 2  }
  0x30   : > { %422 = dma.hbm_to_vmem [thread:$0]  (!%p740_p0), %s734_s30, 128, %s736_s4, %s136_s6, %s643_s29, %s643_s29, %s644_s3  }
  0x31   : > { %p174_p12 = scmp.lt.s32.totalorder %s640_s14, 3  ;;  %s401_s7 = sshll.u32 %s727_s25, 1 }
  0x32   : > { %s402_s8 = sshll.u32 %s636_s13, 5  ;;  %p888_p9 = scmp.ge.s32.totalorder %s640_s14, 1 }
  0x33   : > { %s785_s19 = scalar_lea.hbm %s879_s1, %s402_s8  ;;  %s161_s20 = scalar_lea.vmem [#allocation5], %s401_s7 }
  0x34   : > { %p778_p11 = pnand %p888_p9, %p174_p12  ;;  %s169_s26 = sshll.u32 %s161_s20, 4  ;;  %s170_s26 = int_to_ptr.vmem [resolvable:$true] %s169_s26 }
  0x35   : > { %s158_s30 = scalar_lea.sflag [#allocation6], %s727_s25  ;;  %s524_s4 = scalar_lea.hbm %s785_s19, 32 }
  0x36   : > { %s889_s15 = scalar_select %p778_p11, 1, 0 }
  0x37   : > { %p525_p1 = scmp.ne.s32.totalorder %s785_s19, %s524_s4  ;;  %s529_s28 = scalar_lea.hbm %s879_s1, 64 }
  0x38   : > { %p530_p2 = scmp.lt.u32.totalorder %s785_s19, %s879_s1  ;;  %p531_p5 = scmp.lt.u32.totalorder %s529_s28, %s524_s4 }
  0x39   : > { %p527_p6 = pnand %p525_p1, %p496_p3  ;;  %p533_p7 = scmp.lt.u32.totalorder %s524_s4, %s785_s19 }
  0x3a   : > { %p532_p4 = por %p531_p5, %p530_p2 }
  0x3b   : > { %p528_p13 = pneg %p527_p6 }
  0x3c   : > { %p534_p10 = por %p533_p7, %p532_p4 }
  0x3e   : > { %p535_p12 = pnand %p534_p10, %p528_p13 }
  0x40   : > { %538 = shalt.err (!%p535_p12)
}
  0x41   : > { %s539_s25 = scalar_lea.vmem %s170_s26, 32  ;;  %s645_s7 = smov [#allocation5]  }
  0x42   : > { %p540_p9 = scmp.ne.s32.totalorder %s170_s26, %s539_s25  ;;  %s544_s8 = sshll.u32 %s645_s7, 4  ;;  %s545_s8 = int_to_ptr.vmem [resolvable:$false] %s544_s8 }
  0x43   : > { %s546_s16 = scalar_lea.vmem %s545_s8, 64  ;;  %p547_p8 = scmp.lt.s32.totalorder %s170_s26, %s545_s8 }
  0x44   : > { %p542_p1 = pnand %p540_p9, %p496_p3  ;;  %p548_p11 = scmp.lt.s32.totalorder %s546_s16, %s539_s25 }
  0x46   : > { %p543_p6 = pneg %p542_p1  ;;  %p549_p2 = por %p548_p11, %p547_p8 }
  0x48   : > { %p550_p5 = pnand %p549_p2, %p543_p6 }
  0x4a   : > { %553 = shalt.err (!%p550_p5)
}
  0x4b   : > { %425 = dma.hbm_to_vmem [thread:$0]  (!%p740_p0), %s785_s19, 32, %s170_s26, %s158_s30  }
  0x4c   : > { %p890_p13 = scmp.ne.s32.totalorder %s889_s15, 0 }
  0x4d   : > { %s810_s18 = sand.u32 (!%p890_p13), 1, %s624_s10   ;;  %p891_p3 = scmp.ne.s32.totalorder (!%p890_p13), %s884_s21, 0 }
  0x4e   : > { %178 = sbr.rel (%p890_p13) target bundleno = 170 (0xaa), region = 28  ;;  %s404_s20 = sshll.u32 (!%p890_p13), %s810_s18, 3 }
  0x4f   : > { %s181_s4 = scalar_lea.sflag (!%p890_p13), [#allocation3], %s810_s18  ;;  %s184_s6 = scalar_lea.vmem (!%p890_p13), [#allocation2], %s404_s20 }
  0x55   : > { %607 = dma.done.wait (%p891_p3), %s181_s4, 128  }
  0x56   : > { %609 = vsyncadd (%p891_p3), %s181_s4, 4294967168  ;;  %s405_s5 = sshll.u32 %s810_s18, 1  ;;  %s190_s15 = scalar_lea.sflag [#allocation6], %s810_s18 }
  0x57   : > { %s193_s19 = scalar_lea.vmem [#allocation5], %s405_s5 }
  0x58   : > { %611 = dma.done.wait (%p891_p3), %s190_s15, 32  }
  0x59   : > { %613 = vsyncadd (%p891_p3), %s190_s15, 4294967264  ;;  %v219_v0 = vld [vmem:[%s184_s6] sm:$0x3]  ;;  %v406_v1 = vld [vmem:[%s184_s6 + $0x2] sm:$0x3]  ;;  %vm270_vm5 = vcmask 1041408  }
  0x5a   : > { %v222_v2 = vmax.f32 %v219_v0, %v406_v1  ;;  %v407_v3 = vld [vmem:[%s184_s6 + $0x4] sm:$0x3]  ;;  %v408_v4 = vld [vmem:[%s184_s6 + $0x6] sm:$0x3]  ;;  %v218_v18 = vld [vmem:[%s193_s19] sm:$0x3] }
  0x5b   : > { %vm233_vm0 = vcmp.eq.s32.totalorder %v218_v18, 0  ;;  %vm240_vm1 = vcmp.eq.s32.totalorder %v218_v18, 1  ;;  %vm247_vm2 = vcmp.eq.s32.totalorder %v218_v18, 2  ;;  %vm254_vm3 = vcmp.eq.s32.totalorder %v218_v18, 3  ;;  %s217_s21 = scalar_lea.vmem [#allocation7], %s810_s18  ;;  %s409_s30 = sshll.u32 %s632_s12, 4 }
  0x5c   : > { %v225_v5 = vmax.f32 %v222_v2, %v407_v3  ;;  %v234_v25 = vsel %vm233_vm0, %v219_v0, 0.0  ;;  %vm268_vm4 = vcmp.ne.s32.totalorder %v218_v18, 255  ;;  %s293_s26 = sshll.u32 %s217_s21, 4  ;;  %s831_s29 = scalar_lea.hbm %s880_s2, %s409_s30  ;;  %s826_s26 = int_to_ptr.vmem [resolvable:$true] %s293_s26 }
  0x5d   : > { %v241_v27 = vsel %vm240_vm1, %v406_v1, %v234_v25  ;;  %s280_s3 = scalar_lea.sflag [#allocation4], %s810_s18  ;;  %s554_s25 = scalar_lea.vmem %s826_s26, 16 }
  0x5e   : > { %v228_v6 = vmax.f32 %v225_v5, %v408_v4  ;;  %v248_v32 = vsel %vm247_vm2, %v407_v3, %v241_v27  ;;  %p555_p8 = scmp.ne.s32.totalorder %s826_s26, %s554_s25  ;;  %p892_p0 = scmp.ne.s32.totalorder %s885_s22, 0 }
  0x5f   : > { %v255_v36 = vsel %vm254_vm3, %v408_v4, %v248_v32  ;;  %s646_s12 = smov [#allocation7]  }
  0x60   : > { %v229_v7 = vsub.f32 %v219_v0, %v228_v6  ;;  %v236_v8 = vsub.f32 %v406_v1, %v228_v6  ;;  %v243_v9 = vsub.f32 %v407_v3, %v228_v6  ;;  %v250_v10 = vsub.f32 %v408_v4, %v228_v6  ;;  %p556_p11 = pnand %p555_p8, %p892_p0  ;;  %s558_s7 = sshll.u32 %s646_s12, 4  ;;  %s559_s7 = int_to_ptr.vmem [resolvable:$false] %s558_s7 }
  0x61   : > { %s560_s8 = scalar_lea.vmem %s559_s7, 32  ;;  %p561_p7 = scmp.lt.s32.totalorder %s826_s26, %s559_s7 }
  0x62   : > { %v230_v11 = vmul.f32 1.442695, %v229_v7  ;;  %v237_v12 = vmul.f32 1.442695, %v236_v8  ;;  %v244_v13 = vmul.f32 1.442695, %v243_v9  ;;  %p557_p4 = pneg %p556_p11  ;;  %p562_p10 = scmp.lt.s32.totalorder %s560_s8, %s554_s25 }
  0x63   : > { %v251_v14 = vmul.f32 1.442695, %v250_v10 }
  0x64   : > { %482 = vpow2.f32 %v230_v11  ;;  %p563_p12 = por %p562_p10, %p561_p7 }
  0x65   : > { %484 = vpow2.f32 %v237_v12 }
  0x66   : > { %486 = vpow2.f32 %v244_v13  ;;  %p564_p9 = pnand %p563_p12, %p557_p4 }
  0x67   : > { %488 = vpow2.f32 %v251_v14 }
  0x6e   : > { %v483_v15 = vpop.eup %482 }
  0x6f   : > { %v485_v16 = vpop.eup %484  ;;  %v235_v23 = vsel %vm233_vm0, %v483_v15, 0.0 }
  0x70   : > { %v487_v17 = vpop.eup %486  ;;  %v239_v19 = vadd.f32 %v485_v16, %v483_v15  ;;  %v242_v24 = vsel %vm240_vm1, %v485_v16, %v235_v23 }
  0x71   : > { %v489_v20 = vpop.eup %488  ;;  %v249_v26 = vsel %vm247_vm2, %v487_v17, %v242_v24 }
  0x72   : > { %v246_v21 = vadd.f32 %v487_v17, %v239_v19  ;;  %v256_v28 = vsel %vm254_vm3, %v489_v20, %v249_v26 }
  0x74   : > { %v253_v22 = vadd.f32 %v489_v20, %v246_v21 }
  0x76   : > { %490 = vlog2.f32 %v253_v22 }
  0x77   : > { %492 = vrcp.f32 %v253_v22 }
  0x80   : > { %v491_v29 = vpop.eup %490 }
  0x81   : > { %v493_v30 = vpop.eup %492  ;;  %v258_v31 = vmul.f32 0.6931472, %v491_v29 }
  0x82   : > { %v262_v33 = vmul.f32 %v493_v30, %v256_v28 }
  0x83   : > { %v259_v34 = vadd.f32 %v258_v31, %v228_v6 }
  0x84   : > { %v263_v35 = vsub.f32 1.0, %v262_v33 }
  0x85   : > { %v260_v38 = vsub.f32 %v259_v34, %v255_v36 }
  0x86   : > { %v264_v37 = vmax.f32 %v263_v35, 0.0 }
  0x88   : > { %v265_v39 = vmul.f32 %v264_v37, %v264_v37 }
  0x8a   : > { %v266_v40 = vmul.f32 0.75, %v265_v39 }
  0x8c   : > { %v267_v41 = vmul.f32 %v266_v40, %v260_v38 }
  0x8e   : > { %v269_v42 = vsel %vm268_vm4, %v267_v41, 0.0 }
  0x8f   : > { %v271_v43 = vsel %vm270_vm5, %v269_v42, 0.0 }
  0x90   : > { %v272_v44 = vrot.slane %v271_v43, 4 }
  0x92   : > { %v273_v45 = vadd.f32 %v272_v44, %v271_v43 }
  0x94   : > { %v274_v46 = vrot.slane %v273_v45, 2 }
  0x96   : > { %v275_v47 = vadd.f32 %v274_v46, %v273_v45 }
  0x98   : > { %v276_v48 = vrot.slane %v275_v47, 1 }
  0x9a   : > { %v277_v49 = vadd.f32 %v276_v48, %v275_v47 }
  0x9c   : > { %278 = vst [vmem:[%s217_s21] sm:$0x1] %v277_v49 }
  0x9d   : > { %567 = shalt.err (!%p564_p9)
}
  0x9e   : > { %s568_s16 = scalar_lea.hbm %s831_s29, 16  ;;  %s572_s4 = scalar_lea.hbm %s880_s2, 32 }
  0x9f   : > { %p569_p1 = scmp.ne.s32.totalorder %s831_s29, %s568_s16  ;;  %p573_p5 = scmp.lt.u32.totalorder %s831_s29, %s880_s2 }
  0xa0   : > { %p574_p13 = scmp.lt.u32.totalorder %s572_s4, %s568_s16  ;;  %p576_p8 = scmp.lt.u32.totalorder %s568_s16, %s831_s29 }
  0xa1   : > { %p570_p6 = pnand %p569_p1, %p892_p0 }
  0xa2   : > { %p575_p3 = por %p574_p13, %p573_p5 }
  0xa3   : > { %p571_p2 = pneg %p570_p6 }
  0xa4   : > { %p577_p11 = por %p576_p8, %p575_p3 }
  0xa6   : > { %p578_p4 = pnand %p577_p11, %p571_p2 }
  0xa8   : > { %581 = shalt.err (!%p578_p4)
}
  0xa9   : > { %417 = dma.vmem_to_hbm [thread:$0]  (%p892_p0), %s826_s26, 16, %s831_s29, %s280_s3  }
  0xaa PF: > { %s305_s15 = sand.u32 1, %s620_s9   ;;  %p893_p7 = scmp.ne.s32.totalorder %s886_s24, 0 }
  0xab   : > { %p894_p10 = scmp.ge.s32.totalorder %s640_s14, 2  ;;  %s306_s19 = scalar_lea.sflag [#allocation4], %s305_s15 }
  0xad   : > { %p427_p12 = pnand %p894_p10, %p893_p7 }
  0xaf   : > { %615 = dma.done.wait (!%p427_p12), %s306_s19, 16  }
  0xb0   : > { %617 = vsyncadd (!%p427_p12), %s306_s19, 4294967280  ;;  %s21_s14 = sadd.s32 1, %s640_s14   ;;  %s895_s9 = smov %s624_s10 }
  0xb1   : > { %p18_p9 = scmp.ge.s32.totalorder %s21_s14, 4   ;;  %s896_s10 = smov %s628_s11 }
  0xb2   : > { %s897_s11 = smov %s718_s23  ;;  %s898_s12 = smov %s636_s13 }
  0xb3   : > { %s899_s13 = smov %s901_s17  ;;  %20 = sbr.rel (!%p18_p9) target bundleno = 8 (0x8), region = 89 }
  0xba   :  { %310 = vsyncpa [#allocation3], 1 }
  0xbb   :  { %312 = vsyncpa [#allocation3 + $0x1], 1 }
  0xbc   :  { %313 = vsyncpa [#allocation6], 1 }
  0xbd   :  { %315 = vsyncpa [#allocation6 + $0x1], 1 }
  0xbe   :  { %316 = vsyncpa [#allocation4], 1 }
  0xbf   :  { %318 = vsyncpa [#allocation4 + $0x1], 1 }

</bundles_post_ra>
